<compile_context>
chip_gen: v6e
topology: v6e:2x2x1
jax: 0.10.0
libtpu: 0.0.40
codegen_flags: <defaults>
</compile_context>

<pallas_src>
import numpy as np

import jax
import jax.numpy as jnp
from jax.experimental import pallas as pl
from jax.experimental.pallas import tpu as pltpu

BN_EPS = 1e-5


# ----------------------------------------------------------------------------
# Trace-time constants: tap validity masks and lane-roll offsets
# ----------------------------------------------------------------------------
def _tap_validity(H, W):
    """(9, HW) f32: 1 where tap (dy,dx)'s source pixel is inside the image."""
    HW = H * W
    hh = np.arange(HW) // W
    ww = np.arange(HW) % W
    v = []
    for dy in (-1, 0, 1):
        for dx in (-1, 0, 1):
            v.append(((hh + dy >= 0) & (hh + dy < H) &
                      (ww + dx >= 0) & (ww + dx < W)).astype(np.float32))
    return jnp.asarray(np.stack(v, axis=0))


def _tap_offsets(W):
    """Flat (row-major H*W) source offset of each of the 9 conv taps."""
    return tuple((t // 3 - 1) * W + (t % 3 - 1) for t in range(9))


# ----------------------------------------------------------------------------
# Fused DFEM Pallas kernel: all blocks, one launch, activation VMEM-resident
# ----------------------------------------------------------------------------
def _make_dfem_kernel(n_blocks, tap_offsets, HW):
    def kernel(x_ref, w_ref, b_ref, mask_ref, o_ref):
        x0 = x_ref[...]                                  # (B*C, HW) lane-dense
        y = x0
        for blk in range(n_blocks):                      # DFEM_block chain
            r = y
            # 9 halo-shifted copies (zero 'same'-padding) via lane rolls (XLU);
            # boundary zeros applied with one precomputed mask multiply (VPU).
            pieces = []
            for off in tap_offsets:
                if off == 0:
                    pieces.append(r)
                else:
                    pieces.append(pltpu.roll(r, (-off) % HW, axis=1))
            stacked = jnp.concatenate(pieces, axis=0) * mask_ref[...]  # (9BC, HW)
            # 3x3 conv + all folded BN / FEM affines as ONE MXU matmul.
            conv = jnp.dot(w_ref[blk], stacked,
                           preferred_element_type=jnp.float32)         # (BC, HW)
            y = r + conv + b_ref[blk]                    # DFEM_block residual
        o_ref[...] = (x0 + y).astype(o_ref.dtype)        # DFEM outer residual
    return kernel


def dfem_apply(x2d, w_all, b_all, mask_big, tap_offsets):
    n_blocks, BC, K = w_all.shape
    HW = x2d.shape[1]
    kernel = _make_dfem_kernel(n_blocks, tap_offsets, HW)
    vspec = pl.BlockSpec(memory_space=pltpu.MemorySpace.VMEM)
    flops = int(2 * n_blocks * BC * K * HW)
    bytes_accessed = int(4 * (2 * x2d.size + w_all.size + b_all.size + mask_big.size))
    return pl.pallas_call(
        kernel,
        out_shape=jax.ShapeDtypeStruct(x2d.shape, x2d.dtype),
        in_specs=[vspec, vspec, vspec, vspec],
        out_specs=vspec,
        cost_estimate=pl.CostEstimate(flops=flops, transcendentals=0,
                                      bytes_accessed=bytes_accessed),
        compiler_params=pltpu.CompilerParams(vmem_limit_bytes=16 * 1024 * 1024),
    )(x2d, w_all, b_all, mask_big)


# ----------------------------------------------------------------------------
# Parameter init (deterministic; eval-mode BatchNorm: running mean=0, var=1)
# ----------------------------------------------------------------------------
def bn_params(key, C):
    kg, kb = jax.random.split(key)
    gamma = 1.0 + 0.1 * jax.random.normal(kg, (C,), jnp.float32)
    beta = 0.1 * jax.random.normal(kb, (C,), jnp.float32)
    scale = gamma / jnp.sqrt(1.0 + BN_EPS)
    shift = beta
    return scale, shift


def init_dfem_params(key, C, spa_n1, spe_n2, n_blocks):
    blocks = []
    for _ in range(n_blocks):
        blk = {"spa": [], "spe": []}
        for _ in range(spa_n1):
            key, k1, k2 = jax.random.split(key, 3)
            blk["spa"].append(bn_params(k1, C) + bn_params(k2, C))
        for _ in range(spe_n2):
            key, k1, k2 = jax.random.split(key, 3)
            blk["spe"].append(bn_params(k1, C) + bn_params(k2, C))
        key, kw, kb, kbn, klp = jax.random.split(key, 5)
        fan_in = 2 * C * 9
        w_hwio = jax.random.normal(kw, (3, 3, 2 * C, C), jnp.float32) * (2.0 / fan_in) ** 0.5
        blk["conv_w9"] = w_hwio.reshape(9, 2 * C, C)      # [tap, Cin=2C, Cout=C]
        blk["conv_b"] = 0.01 * jax.random.normal(kb, (C,), jnp.float32)
        blk["conv_bn"] = bn_params(kbn, C)
        blk["lp_bn2"] = bn_params(klp, C)                 # _3DLPFEM.norm2
        blocks.append(blk)
    return blocks


# ----------------------------------------------------------------------------
# Trace-time folding: FEM stacks + residuals + conv bias + BN + _3DLPFEM
#   -> per-tap weights wr (9, Cout, Cin) and a bias map (Cout, HW)
# ----------------------------------------------------------------------------
def _fold_block(blk, C, valid_taps):
    def stack_affine(fems):
        a = jnp.ones((C,), jnp.float32)
        b = jnp.zeros((C,), jnp.float32)
        for (s1, sh1, s2, sh2) in fems:
            # single FEM (identity attention/SSM branches):
            #   t = x + 2*BN1(x);  out = BN2(t) + t   ->  out = ai*x + bi
            ai = (1.0 + 2.0 * s1) * (1.0 + s2)
            bi = 2.0 * sh1 * (1.0 + s2) + sh2
            a, b = ai * a, ai * b + bi
        return a, b

    a_spa, b_spa = stack_affine(blk["spa"])
    a_spe, b_spe = stack_affine(blk["spe"])
    a1, b1 = 1.0 + a_spa, b_spa            # x1 = r + SpaFEM_stack(r)
    a2, b2 = 1.0 + a_spe, b_spe            # x2 = r + SpeFEM_stack(r)

    cs, csh = blk["conv_bn"]
    ls, lsh = blk["lp_bn2"]
    cb = blk["conv_b"]
    g = cs * 3.0 * (1.0 + ls)                               # output scale
    beta = (cb * cs + csh) * 3.0 * (1.0 + ls) + lsh         # output shift

    w9 = blk["conv_w9"]                                     # (9, 2C, C)
    wf = w9 * g[None, None, :]                              # fold output scale
    # fold x1/x2 per-channel scales into the input-channel halves
    w_a = wf[:, :C, :] * a1[None, :, None] + wf[:, C:, :] * a2[None, :, None]
    wr = jnp.transpose(w_a, (0, 2, 1))                      # (9, Cout, Cin)

    # conv contribution of the per-channel shifts (boundary-aware) + beta
    bconv = (jnp.einsum("tco,c->to", wf[:, :C, :], b1)
             + jnp.einsum("tco,c->to", wf[:, C:, :], b2))   # (9, Cout)
    bias_map = jnp.einsum("to,tp->op", bconv, valid_taps) + beta[:, None]
    return wr, bias_map


# ----------------------------------------------------------------------------
# DFEM forward: one Pallas kernel for the whole thing
# ----------------------------------------------------------------------------
def dfem_forward(x_nchw, params):
    B, C, H, W = x_nchw.shape
    HW = H * W
    x2d = x_nchw.astype(jnp.float32).reshape(B * C, HW)     # batch folded in sublanes
    valid_taps = _tap_validity(H, W)                         # (9, HW)
    tap_offsets = _tap_offsets(W)
    eye_b = jnp.eye(B, dtype=jnp.float32)

    w_blocks, b_blocks = [], []
    for blk in params:
        wr, bias_map = _fold_block(blk, C, valid_taps)       # (9,C,C), (C,HW)
        # block-diagonal over batch: row b*C+o, col t*(B*C)+b*C+i
        w_big = jnp.einsum("toi,bd->botdi", wr, eye_b).reshape(B * C, 9 * B * C)
        w_blocks.append(w_big)
        b_blocks.append(jnp.tile(bias_map, (B, 1)))          # (B*C, HW)
    w_all = jnp.stack(w_blocks, axis=0)                      # (N3, B*C, 9*B*C)
    b_all = jnp.stack(b_blocks, axis=0)                      # (N3, B*C, HW)
    mask_big = jnp.repeat(valid_taps, B * C, axis=0)         # (9*B*C, HW)

    y = dfem_apply(x2d, w_all, b_all, mask_big, tap_offsets)
    return y.reshape(B, C, H, W)


# ----------------------------------------------------------------------------
# Pure-JAX reference (same semantics, unfused) for a correctness check
# ----------------------------------------------------------------------------
def dfem_reference(x_nchw, params):
    x = x_nchw.astype(jnp.float32)
    B, C, H, W = x.shape

    def fem(v, s1, sh1, s2, sh2):
        s1 = s1[None, :, None, None]; sh1 = sh1[None, :, None, None]
        s2 = s2[None, :, None, None]; sh2 = sh2[None, :, None, None]
        y = v * s1 + sh1
        t = v + 2.0 * y
        return t * s2 + sh2 + t

    def conv_bn(v, w9, b, s, sh):
        vp = jnp.pad(v, ((0, 0), (0, 0), (1, 1), (1, 1)))
        out = jnp.zeros((B, w9.shape[-1], H, W), jnp.float32)
        t = 0
        for dy in range(3):
            for dx in range(3):
                out = out + jnp.einsum("bchw,co->bohw",
                                       vp[:, :, dy:dy + H, dx:dx + W], w9[t])
                t += 1
        out = out + b[None, :, None, None]
        return out * s[None, :, None, None] + sh[None, :, None, None]

    residual0 = x
    y = x
    for blk in params:
        r = y
        x1 = y
        for (s1, sh1, s2, sh2) in blk["spa"]:
            x1 = fem(x1, s1, sh1, s2, sh2)
        x1 = r + x1
        x2 = y
        for (s1, sh1, s2, sh2) in blk["spe"]:
            x2 = fem(x2, s1, sh1, s2, sh2)
        x2 = r + x2
        xc = jnp.concatenate([x1, x2], axis=1)
        cs, csh = blk["conv_bn"]
        xc = conv_bn(xc, blk["conv_w9"], blk["conv_b"], cs, csh)
        ls, lsh = blk["lp_bn2"]
        t3 = 3.0 * xc                                   # _3DLPFEM (identity branches)
        xc = t3 * ls[None, :, None, None] + lsh[None, :, None, None] + t3
        y = r + xc
    return residual0 + y


# ----------------------------------------------------------------------------
if __name__ == "__main__":
    B, C, H, W = 2, 4, 16, 16               # NCHW input, conv_inchannels = C
    SpaFEM_N1, SpeFEM_N2, DFEM_block_N3 = 2, 2, 1

    key = jax.random.PRNGKey(0)
    kx, kp = jax.random.split(key)
    x = jax.random.normal(kx, (B, C, H, W), jnp.float32)
    params = init_dfem_params(kp, C, SpaFEM_N1, SpeFEM_N2, DFEM_block_N3)

    out = jax.block_until_ready(jax.jit(dfem_forward)(x, params))
    ref = jax.block_until_ready(dfem_reference(x, params))

    assert out.shape == (B, C, H, W)
    rel_err = float(jnp.max(jnp.abs(out - ref)) / (jnp.max(jnp.abs(ref)) + 1e-6))
    assert rel_err < 1e-4, f"mismatch vs reference: rel err {rel_err}"

    print("KERNEL_OK")
</pallas_src>

<mosaic_0001>
module attributes {stable_mosaic.version = 11 : i64} {
  func.func @kernel(%arg0: memref<8x256xf32, #tpu.memory_space<vmem>>, %arg1: memref<1x8x72xf32, #tpu.memory_space<vmem>>, %arg2: memref<1x8x256xf32, #tpu.memory_space<vmem>>, %arg3: memref<72x256xf32, #tpu.memory_space<vmem>>, %arg4: memref<8x256xf32, #tpu.memory_space<vmem>>) attributes {dimension_semantics = [], scalar_prefetch = 0 : i64, scratch_operands = 0 : i64, tpu.core_type = #tpu.core_type<tc>} {
    %c0 = arith.constant 0 : index
    %c0_0 = arith.constant 0 : index
    %0 = vector.load %arg0[%c0, %c0_0] : memref<8x256xf32, #tpu.memory_space<vmem>>, vector<8x256xf32>
    %c17_i32 = arith.constant 17 : i32
    %1 = tpu.dynamic_rotate %0 by %c17_i32 dim 1 : vector<8x256xf32>, i32 -> vector<8x256xf32>
    %c16_i32 = arith.constant 16 : i32
    %2 = tpu.dynamic_rotate %0 by %c16_i32 dim 1 : vector<8x256xf32>, i32 -> vector<8x256xf32>
    %c15_i32 = arith.constant 15 : i32
    %3 = tpu.dynamic_rotate %0 by %c15_i32 dim 1 : vector<8x256xf32>, i32 -> vector<8x256xf32>
    %c1_i32 = arith.constant 1 : i32
    %4 = tpu.dynamic_rotate %0 by %c1_i32 dim 1 : vector<8x256xf32>, i32 -> vector<8x256xf32>
    %c255_i32 = arith.constant 255 : i32
    %5 = tpu.dynamic_rotate %0 by %c255_i32 dim 1 : vector<8x256xf32>, i32 -> vector<8x256xf32>
    %c241_i32 = arith.constant 241 : i32
    %6 = tpu.dynamic_rotate %0 by %c241_i32 dim 1 : vector<8x256xf32>, i32 -> vector<8x256xf32>
    %c240_i32 = arith.constant 240 : i32
    %7 = tpu.dynamic_rotate %0 by %c240_i32 dim 1 : vector<8x256xf32>, i32 -> vector<8x256xf32>
    %c239_i32 = arith.constant 239 : i32
    %8 = tpu.dynamic_rotate %0 by %c239_i32 dim 1 : vector<8x256xf32>, i32 -> vector<8x256xf32>
    %9 = tpu.concatenate %1, %2, %3, %4, %0, %5, %6, %7, %8 in 0 : vector<8x256xf32>, vector<8x256xf32>, vector<8x256xf32>, vector<8x256xf32>, vector<8x256xf32>, vector<8x256xf32>, vector<8x256xf32>, vector<8x256xf32>, vector<8x256xf32> -> vector<72x256xf32>
    %c0_1 = arith.constant 0 : index
    %c0_2 = arith.constant 0 : index
    %10 = vector.load %arg3[%c0_1, %c0_2] : memref<72x256xf32, #tpu.memory_space<vmem>>, vector<72x256xf32>
    %11 = arith.mulf %9, %10 : vector<72x256xf32>
    %c0_3 = arith.constant 0 : index
    %c0_4 = arith.constant 0 : index
    %c0_5 = arith.constant 0 : index
    %12 = vector.load %arg1[%c0_3, %c0_4, %c0_5] : memref<1x8x72xf32, #tpu.memory_space<vmem>>, vector<1x8x72xf32>
    %13 = vector.shape_cast %12 : vector<1x8x72xf32> to vector<8x72xf32>
    %cst = arith.constant dense<0.000000e+00> : vector<8x256xf32>
    %14 = tpu.matmul %13, %11, %cst {dimension_numbers = #tpu.dot_dimension_numbers<[1], [0], [0], [1], [0, 0, 1, 1], [], []>} : vector<8x72xf32>, vector<72x256xf32>, vector<8x256xf32> -> vector<8x256xf32>
    %15 = arith.addf %0, %14 : vector<8x256xf32>
    %c0_6 = arith.constant 0 : index
    %c0_7 = arith.constant 0 : index
    %c0_8 = arith.constant 0 : index
    %16 = vector.load %arg2[%c0_6, %c0_7, %c0_8] : memref<1x8x256xf32, #tpu.memory_space<vmem>>, vector<1x8x256xf32>
    %17 = vector.shape_cast %16 : vector<1x8x256xf32> to vector<8x256xf32>
    %18 = arith.addf %15, %17 : vector<8x256xf32>
    %19 = arith.addf %0, %18 : vector<8x256xf32>
    %c0_9 = arith.constant 0 : index
    %c0_10 = arith.constant 0 : index
    %20 = vector.load %arg4[%c0_9, %c0_10] : memref<8x256xf32, #tpu.memory_space<vmem>>, vector<8x256xf32>
    tpu.vector_store %arg4[%c0_9, %c0_10], %19 {strides = array<i32>} : memref<8x256xf32, #tpu.memory_space<vmem>>, vector<8x256xf32>,
    return
  }
}

</mosaic_0001>

<bundles_post_ra>
// kernel: dfem_forward.1
= control target key start
LH: loop header
LB: loop body
LE: loop exit
PB: predicated region body
PF: predicated region fallthrough
CT: control target
= control target key end

     0   :  { %s213_s17 = smov 112   ;;  %s214_s18 = smov 111   ;;  %v218_v2 = vmov 0.0   ;;  %v23_v3 = vlaneseq  ;;  %vm114_vm8 = vcmask 588800   ;;  %s358_s0 = inlined_call_operand.vmem [shape: f32[8,256], index: 0, kind: input, shape index: {}]   ;;  %s359_s3 = inlined_call_operand.vmem [shape: f32[72,256], index: 3, kind: input, shape index: {}]   ;;  %s360_s1 = inlined_call_operand.vmem [shape: f32[1,8,72], index: 1, kind: input, shape index: {}]   ;;  %s361_s2 = inlined_call_operand.vmem [shape: f32[1,8,256], index: 2, kind: input, shape index: {}]   ;;  %s362_s4 = inlined_call_operand.vmem [shape: f32[8,256], index: 4, kind: output, shape index: {}]  }
   0x1   :  { %v250_v0 = vld [vmem:[%s358_s0] sm:$0xff]  ;;  %v257_v1 = vld [vmem:[%s358_s0 + $0x8] sm:$0xff]  ;;  %s215_s21 = smov 113   ;;  %s216_s22 = smov 127   ;;  %182 = vmatprep.mubr.f32.mxu0 %v218_v2  ;;  %v92_v11 = vld [vmem:[%s359_s3 + $0x78] sm:$0xff] }
   0x2   :  { %63 = vrot.lane.b32.xlu1 %v250_v0, %s213_s17  ;;  %70 = vrot.lane.b32.xlu0 %v250_v0, %s214_s18  ;;  %s217_s23 = smov 1   ;;  %s219_s0 = smov 15   ;;  %v273_v4 = vand.u32 127, %v23_v3  ;;  %v94_v7 = vld [vmem:[%s359_s3 + $0x88] sm:$0xff]  ;;  %v93_v8 = vld [vmem:[%s359_s3 + $0x80] sm:$0xff] }
   0x3   :  { %s220_s24 = smov 16   ;;  %s221_s25 = smov 17   ;;  %v91_v15 = vld [vmem:[%s359_s3 + $0x70] sm:$0xff]  ;;  %v89_v19 = vld [vmem:[%s359_s3 + $0x60] sm:$0xff]  ;;  %v90_v20 = vld [vmem:[%s359_s3 + $0x68] sm:$0xff] }
   0x4   :  { %vm67_vm0 = vcmp.lt.s32.totalorder %v273_v4, 112  ;;  %vm74_vm1 = vcmp.lt.s32.totalorder %v273_v4, 111  ;;  %vm60_vm2 = vcmp.lt.s32.totalorder %v273_v4, 113  ;;  %vm53_vm3 = vcmp.lt.s32.totalorder %v273_v4, 127  ;;  %v87_v29 = vld [vmem:[%s359_s3 + $0x50] sm:$0xff]  ;;  %v88_v30 = vld [vmem:[%s359_s3 + $0x58] sm:$0xff] }
   0x5   :  { %v86_v31 = vld [vmem:[%s359_s3 + $0x48] sm:$0xff]  ;;  %v85_v34 = vld [vmem:[%s359_s3 + $0x40] sm:$0xff]  ;;  %vm46_vm4 = vcmp.lt.s32.totalorder %v273_v4, 1  ;;  %v83_v40 = vld [vmem:[%s359_s3 + $0x30] sm:$0xff]  ;;  %vm39_vm5 = vcmp.lt.s32.totalorder %v273_v4, 15  ;;  %vm32_vm6 = vcmp.lt.s32.totalorder %v273_v4, 16 }
   0x6   :  { %65 = vrot.lane.b32.xlu1 %v257_v1, %s213_s17  ;;  %72 = vrot.lane.b32.xlu0 %v257_v1, %s214_s18  ;;  %v104_v39 = vmul.f32 %v86_v31, %v257_v1  ;;  %v84_v41 = vld [vmem:[%s359_s3 + $0x38] sm:$0xff]  ;;  %v103_v42 = vmul.f32 %v85_v34, %v250_v0  ;;  %v81_v49 = vld [vmem:[%s359_s3 + $0x20] sm:$0xff]  ;;  %vm25_vm7 = vcmp.lt.s32.totalorder %v273_v4, 17 }
   0x7   :  { %v82_v50 = vld [vmem:[%s359_s3 + $0x28] sm:$0xff]  ;;  %v79_v57 = vld [vmem:[%s359_s3 + $0x10] sm:$0xff]  ;;  %v80_v58 = vld [vmem:[%s359_s3 + $0x18] sm:$0xff] }
   0x8   :  { %v77_v3 = vld [vmem:[%s359_s3] sm:$0xff] }
   0x9   :  { %v113_v4 = vld [vmem:[%s360_s1] sm:$0xff] }
   0xa   :  { %58 = vrot.lane.b32.xlu1 %v257_v1, %s215_s21  ;;  %56 = vrot.lane.b32.xlu0 %v250_v0, %s215_s21 }
   0xe   :  { %51 = vrot.lane.b32.xlu1 %v257_v1, %s216_s22  ;;  %49 = vrot.lane.b32.xlu0 %v250_v0, %s216_s22 }
  0x12   :  { %44 = vrot.lane.b32.xlu1 %v257_v1, %s217_s23  ;;  %42 = vrot.lane.b32.xlu0 %v250_v0, %s217_s23 }
  0x16   :  { %37 = vrot.lane.b32.xlu1 %v257_v1, %s219_s0  ;;  %35 = vrot.lane.b32.xlu0 %v250_v0, %s219_s0 }
  0x1a   :  { %30 = vrot.lane.b32.xlu1 %v257_v1, %s220_s24  ;;  %28 = vrot.lane.b32.xlu0 %v250_v0, %s220_s24 }
  0x1e   :  { %21 = vrot.lane.b32.xlu1 %v257_v1, %s221_s25  ;;  %19 = vrot.lane.b32.xlu0 %v250_v0, %s221_s25 }
  0x74   :  { %v64_v5 = vpop.permute.xlu1 %63  ;;  %v71_v6 = vpop.permute.xlu0 %70 }
  0x78   :  { %v66_v9 = vpop.permute.xlu1 %65  ;;  %v73_v10 = vpop.permute.xlu0 %72 }
  0x79   :  { %v69_v12 = vsel %vm67_vm0, %v66_v9, %v64_v5  ;;  %v75_v13 = vsel %vm74_vm1, %v71_v6, %v73_v10  ;;  %v76_v14 = vsel %vm74_vm1, %v73_v10, %v71_v6  ;;  %v68_v16 = vsel %vm67_vm0, %v64_v5, %v66_v9  ;;  %v78_v5 = vld [vmem:[%s359_s3 + $0x8] sm:$0xff] }
  0x7a   :  { %v112_v17 = vmul.f32 %v94_v7, %v76_v14  ;;  %v111_v18 = vmul.f32 %v93_v8, %v75_v13  ;;  %v110_v21 = vmul.f32 %v92_v11, %v69_v12  ;;  %v109_v24 = vmul.f32 %v91_v15, %v68_v16  ;;  %v191_v13 = vld [vmem:[%s361_s2] sm:$0xff]  ;;  %v192_v16 = vld [vmem:[%s361_s2 + $0x8] sm:$0xff] }
  0x7c   :  { %v59_v22 = vpop.permute.xlu1 %58  ;;  %132 = vmatprep.subr.mxu0 %v112_v17  ;;  %v57_v23 = vpop.permute.xlu0 %56 }
  0x7d   :  { %v61_v25 = vsel %vm60_vm2, %v57_v23, %v59_v22  ;;  %v62_v26 = vsel %vm60_vm2, %v59_v22, %v57_v23  ;;  %133 = vmatpush1.msra.mxu0 %v111_v18 }
  0x7e   :  { %v107_v27 = vmul.f32 %v89_v19, %v61_v25  ;;  %v108_v28 = vmul.f32 %v90_v20, %v62_v26  ;;  %134 = vmatprep.subr.mxu0 %v110_v21 }
  0x7f   :  { %135 = vmatpush1.msra.mxu0 %v109_v24 }
  0x80   :  { %v52_v32 = vpop.permute.xlu1 %51  ;;  %136 = vmatprep.subr.mxu0 %v108_v28  ;;  %v50_v33 = vpop.permute.xlu0 %49 }
  0x81   :  { %v54_v35 = vsel %vm53_vm3, %v50_v33, %v52_v32  ;;  %v55_v36 = vsel %vm53_vm3, %v52_v32, %v50_v33  ;;  %137 = vmatpush1.msra.mxu0 %v107_v27 }
  0x82   :  { %v105_v37 = vmul.f32 %v87_v29, %v54_v35  ;;  %v106_v38 = vmul.f32 %v88_v30, %v55_v36 }
  0x84   :  { %v45_v43 = vpop.permute.xlu1 %44  ;;  %138 = vmatprep.subr.mxu0 %v106_v38  ;;  %v43_v44 = vpop.permute.xlu0 %42 }
  0x85   :  { %v47_v45 = vsel %vm46_vm4, %v43_v44, %v45_v43  ;;  %v48_v46 = vsel %vm46_vm4, %v45_v43, %v43_v44  ;;  %139 = vmatpush1.msra.mxu0 %v105_v37 }
  0x86   :  { %v101_v47 = vmul.f32 %v83_v40, %v48_v46  ;;  %v102_v48 = vmul.f32 %v84_v41, %v47_v45  ;;  %140 = vmatprep.subr.mxu0 %v104_v39 }
  0x87   :  { %141 = vmatpush1.msra.mxu0 %v103_v42 }
  0x88   :  { %v38_v51 = vpop.permute.xlu1 %37  ;;  %v36_v52 = vpop.permute.xlu0 %35  ;;  %142 = vmatprep.subr.mxu0 %v102_v48 }
  0x89   :  { %v40_v53 = vsel %vm39_vm5, %v36_v52, %v38_v51  ;;  %v41_v54 = vsel %vm39_vm5, %v38_v51, %v36_v52  ;;  %143 = vmatpush1.msra.mxu0 %v101_v47 }
  0x8a   :  { %v99_v55 = vmul.f32 %v81_v49, %v41_v54  ;;  %v100_v56 = vmul.f32 %v82_v50, %v40_v53 }
  0x8c   :  { %v31_v59 = vpop.permute.xlu1 %30  ;;  %v29_v60 = vpop.permute.xlu0 %28  ;;  %144 = vmatprep.subr.mxu0 %v100_v56 }
  0x8d   :  { %v33_v61 = vsel %vm32_vm6, %v29_v60, %v31_v59  ;;  %v34_v62 = vsel %vm32_vm6, %v31_v59, %v29_v60  ;;  %145 = vmatpush1.msra.mxu0 %v99_v55 }
  0x8e   :  { %v97_v63 = vmul.f32 %v79_v57, %v34_v62  ;;  %v98_v2 = vmul.f32 %v80_v58, %v33_v61 }
  0x90   :  { %v22_v6 = vpop.permute.xlu1 %21  ;;  %v20_v7 = vpop.permute.xlu0 %19  ;;  %146 = vmatprep.subr.mxu0 %v98_v2 }
  0x91   :  { %v26_v8 = vsel %vm25_vm7, %v20_v7, %v22_v6  ;;  %v27_v9 = vsel %vm25_vm7, %v22_v6, %v20_v7  ;;  %147 = vmatpush1.msra.mxu0 %v97_v63 }
  0x92   :  { %v95_v10 = vmul.f32 %v77_v3, %v27_v9  ;;  %v96_v11 = vmul.f32 %v78_v5, %v26_v8 }
  0x94   :  { %148 = vmatprep.subr.mxu0 %v96_v11 }
  0x95   :  { %149 = vmatpush1.msra.mxu0 %v95_v10 }
  0x96   :  { %203 = vmatmul.mubr.msk.f32.vlgmr.msra.gmra.mxu0 %vm114_vm8, %v113_v4 }
 0x156   :  { %v184_v12 = vpop.f32.mrf.mxu0 }
 0x157   :  { %v189_v14 = vadd.f32 %v184_v12, %v250_v0 }
 0x158   :  { %v186_v15 = vpop.f32.mrf.mxu0 }
 0x159   :  { %v193_v17 = vadd.f32 %v191_v13, %v189_v14  ;;  %v190_v18 = vadd.f32 %v186_v15, %v257_v1 }
 0x15b   :  { %v195_v19 = vadd.f32 %v193_v17, %v250_v0  ;;  %v194_v20 = vadd.f32 %v192_v16, %v190_v18 }
 0x15d   :  { %197 = vst [vmem:[%s362_s4] sm:$0xff] %v195_v19  ;;  %v196_v21 = vadd.f32 %v194_v20, %v257_v1 }
 0x15f   :  { %198 = vst [vmem:[%s362_s4 + $0x8] sm:$0xff] %v196_v21 }

</bundles_post_ra>
